<compile_context>
chip_gen: v7x
topology: tpu7x:2x2x1
jax: 0.10.0
libtpu: 0.0.40
codegen_flags: <defaults>
</compile_context>

<pallas_src>
import functools

import jax
import jax.numpy as jnp
from jax.experimental import pallas as pl
from jax.experimental.pallas import tpu as pltpu


def _round_up(x, m):
    return ((x + m - 1) // m) * m


# ---------------------------------------------------------------------------
# Pallas kernel: (in-VMEM im2col) @ weight  + per-channel bias + ReLU
# ---------------------------------------------------------------------------
def _conv_relu_kernel(x_ref, w_ref, b_ref, o_ref, *, offsets, lc):
    # x_ref: (1, C_in, L_in)      bf16  flattened padded image (one batch element)
    # w_ref: (TCO, KH*KW*C_in)    bf16  matmul-ready weight tile
    # b_ref: (TCO, 1)             f32   per-channel bias (folded BN; zeros if bn=False)
    # o_ref: (1, TCO, Lc)         f32   lane-dense output tile (flat spatial on lanes)
    x = x_ref[0]                                     # (C_in, L_in)
    # Fused im2col: KH*KW statically shifted views stacked on the contraction dim.
    cols = [x[:, o:o + lc] for o in offsets]         # each (C_in, Lc)
    xcat = jnp.concatenate(cols, axis=0)             # (KH*KW*C_in, Lc), VMEM only
    acc = jnp.dot(w_ref[...], xcat, preferred_element_type=jnp.float32)
    acc = acc + b_ref[...]                           # broadcast over lanes
    o_ref[0] = jnp.maximum(acc, 0.0).astype(o_ref.dtype)


def _fused_conv_bn_relu(x, w2d, bias, *, kh, kw, stride, padding, dilation, c_out):
    """x: (N, C_in, H, W) f32.  w2d: (C_out_pad, KH*KW*C_in) bf16, (i, j, ci) ordering.
    bias: (C_out_pad, 1) f32.  Returns relu(conv(x) [+bn]) as (N, C_out, H_out, W_out)."""
    N, C_in, H, W = x.shape
    d = dilation
    H_pad, W_pad = H + 2 * padding, W + 2 * padding
    H1 = H_pad - d * (kh - 1)           # dense (stride-1) output height
    W1 = W_pad - d * (kw - 1)           # dense (stride-1) output width
    assert H1 >= 1 and W1 >= 1, "kernel larger than padded input"

    L = H_pad * W_pad
    o_max = d * (kh - 1) * W_pad + d * (kw - 1)     # largest flat window offset
    Lc = _round_up(H1 * W_pad, 128)                 # lane-dense output width
    L_in = o_max + Lc                               # flat input length incl. tail pad
    offsets = tuple(i * d * W_pad + j * d for i in range(kh) for j in range(kw))

    # Layout glue only (cheap): spatial zero-pad, flatten, tail-pad, bf16 cast.
    xp = jnp.pad(x, ((0, 0), (0, 0), (padding, padding), (padding, padding)))
    xf = xp.reshape(N, C_in, L)
    xf = jnp.pad(xf, ((0, 0), (0, 0), (0, L_in - L))).astype(jnp.bfloat16)

    C_out_pad, K_total = w2d.shape
    TCO = C_out_pad if C_out_pad <= 256 else 256    # C_out tile (mult. of 8 when tiled)

    kernel = functools.partial(_conv_relu_kernel, offsets=offsets, lc=Lc)

    out = pl.pallas_call(
        kernel,
        out_shape=jax.ShapeDtypeStruct((N, C_out_pad, Lc), jnp.float32),
        grid_spec=pltpu.PrefetchScalarGridSpec(
            num_scalar_prefetch=0,
            grid=(N, C_out_pad // TCO),
            in_specs=[
                pl.BlockSpec((1, C_in, L_in), lambda n, co: (n, 0, 0)),
                pl.BlockSpec((TCO, K_total), lambda n, co: (co, 0)),
                pl.BlockSpec((TCO, 1), lambda n, co: (co, 0)),
            ],
            out_specs=pl.BlockSpec((1, TCO, Lc), lambda n, co: (n, co, 0)),
        ),
        compiler_params=pltpu.CompilerParams(
            dimension_semantics=("parallel", "parallel"),
            vmem_limit_bytes=32 * 1024 * 1024,
        ),
    )(xf, w2d, bias)

    # Valid dense (stride-1) outputs live at flat column ho*W_pad + wo -> already NCHW.
    out = out[:, :c_out, : H1 * W_pad].reshape(N, c_out, H1, W_pad)[:, :, :, :W1]
    if stride != 1:
        # TODO(synk): stride>1 computes the dense stride-1 conv and subsamples
        # (stride**2 extra MXU work); a dedicated strided path would avoid it.
        out = out[:, :, ::stride, ::stride]
    return out


# ---------------------------------------------------------------------------
# BasicConv2d module
# ---------------------------------------------------------------------------
class BasicConv2d:
    def __init__(self, in_planes, out_planes, kernel_size, stride=1,
                 padding=0, dilation=1, bn=False, *, key=None, eps=1e-5):
        self.in_planes = in_planes
        self.out_planes = out_planes
        self.kernel_size = ((kernel_size, kernel_size)
                            if isinstance(kernel_size, int) else tuple(kernel_size))
        self.stride = stride
        self.padding = padding
        self.dilation = dilation
        self.use_bn = bn
        if key is None:
            key = jax.random.PRNGKey(0)
        kh, kw = self.kernel_size

        # Conv2d weight (C_out, C_in, KH, KW), normal_(std=0.01), no bias.
        self.weight = 0.01 * jax.random.normal(
            key, (out_planes, in_planes, kh, kw), dtype=jnp.float32)

        # Inference-mode BatchNorm2d (weight=1, bias=0, running_mean=0, running_var=1)
        # folded into the conv weight + per-channel bias.
        # TODO(synk): training-mode BatchNorm2d (batch statistics) is not implemented.
        if bn:
            gamma = jnp.ones((out_planes,), jnp.float32)
            beta = jnp.zeros((out_planes,), jnp.float32)
            mean = jnp.zeros((out_planes,), jnp.float32)
            var = jnp.ones((out_planes,), jnp.float32)
            scale = gamma / jnp.sqrt(var + eps)
            w_eff = self.weight * scale[:, None, None, None]
            b_eff = beta - mean * scale
        else:
            w_eff = self.weight
            b_eff = jnp.zeros((out_planes,), jnp.float32)

        # Matmul-ready layout computed ONCE: (C_out_pad, KH*KW*C_in), (i, j, ci) order.
        w2d = w_eff.transpose(0, 2, 3, 1).reshape(out_planes, kh * kw * in_planes)
        c_out_pad = out_planes if out_planes <= 256 else _round_up(out_planes, 256)
        if c_out_pad != out_planes:
            w2d = jnp.pad(w2d, ((0, c_out_pad - out_planes), (0, 0)))
            b_eff = jnp.pad(b_eff, (0, c_out_pad - out_planes))
        self.w2d = w2d.astype(jnp.bfloat16)
        self.bias = b_eff.reshape(c_out_pad, 1).astype(jnp.float32)

    def __call__(self, x):
        kh, kw = self.kernel_size
        return _fused_conv_bn_relu(
            x.astype(jnp.float32), self.w2d, self.bias,
            kh=kh, kw=kw, stride=self.stride, padding=self.padding,
            dilation=self.dilation, c_out=self.out_planes)


# ---------------------------------------------------------------------------
if __name__ == "__main__":
    key = jax.random.PRNGKey(0)
    k_w, k_x = jax.random.split(key)

    N, C_in, H, W = 2, 4, 16, 16
    C_out, ksize, stride, padding = 8, 3, 1, 1

    module = BasicConv2d(C_in, C_out, ksize, stride=stride, padding=padding,
                         dilation=1, bn=False, key=k_w)
    x = jax.random.normal(k_x, (N, C_in, H, W), dtype=jnp.float32)

    y = jax.block_until_ready(module(x))

    # Reference: f32 conv + relu.
    ref = jax.lax.conv_general_dilated(
        x, module.weight, window_strides=(stride, stride),
        padding=((padding, padding), (padding, padding)),
        dimension_numbers=("NCHW", "OIHW", "NCHW"))
    ref = jnp.maximum(ref, 0.0)

    assert y.shape == ref.shape, (y.shape, ref.shape)
    max_err = float(jnp.max(jnp.abs(y - ref)))
    # bf16 operands with f32 accumulation -> loosened tolerance vs f32 reference.
    assert jnp.allclose(y, ref, atol=5e-3, rtol=5e-2), max_err

    print("KERNEL_OK")
</pallas_src>

<mosaic_0001>
module attributes {stable_mosaic.version = 11 : i64} {
  func.func @_conv_relu_kernel(%arg0: i32, %arg1: i32, %arg2: memref<1x4x422xbf16, #tpu.memory_space<vmem>>, %arg3: memref<8x36xbf16, #tpu.memory_space<vmem>>, %arg4: memref<8x1xf32, #tpu.memory_space<vmem>>, %arg5: memref<1x8x384xf32, #tpu.memory_space<vmem>>) attributes {dimension_semantics = [#tpu.dimension_semantics<parallel>, #tpu.dimension_semantics<parallel>], iteration_bounds = array<i64: 2, 1>, scalar_prefetch = 0 : i64, scratch_operands = 0 : i64, tpu.core_type = #tpu.core_type<tc>, window_params = [{transform_indices = @transform_0, window_bounds = array<i64: 1, 4, 422>}, {transform_indices = @transform_1, window_bounds = array<i64: 8, 36>}, {transform_indices = @transform_2, window_bounds = array<i64: 8, 1>}, {transform_indices = @transform_3, window_bounds = array<i64: 1, 8, 384>}]} {
    %c0 = arith.constant 0 : index
    %c0_0 = arith.constant 0 : index
    %c0_1 = arith.constant 0 : index
    %0 = vector.load %arg2[%c0, %c0_0, %c0_1] : memref<1x4x422xbf16, #tpu.memory_space<vmem>>, vector<1x4x422xbf16>
    %1 = vector.shape_cast %0 : vector<1x4x422xbf16> to vector<4x422xbf16>
    %2 = vector.extract_strided_slice %1 {offsets = [0, 0], sizes = [4, 384], strides = [1, 1]} : vector<4x422xbf16> to vector<4x384xbf16>
    %3 = vector.extract_strided_slice %1 {offsets = [0, 1], sizes = [4, 384], strides = [1, 1]} : vector<4x422xbf16> to vector<4x384xbf16>
    %4 = vector.extract_strided_slice %1 {offsets = [0, 2], sizes = [4, 384], strides = [1, 1]} : vector<4x422xbf16> to vector<4x384xbf16>
    %5 = vector.extract_strided_slice %1 {offsets = [0, 18], sizes = [4, 384], strides = [1, 1]} : vector<4x422xbf16> to vector<4x384xbf16>
    %6 = vector.extract_strided_slice %1 {offsets = [0, 19], sizes = [4, 384], strides = [1, 1]} : vector<4x422xbf16> to vector<4x384xbf16>
    %7 = vector.extract_strided_slice %1 {offsets = [0, 20], sizes = [4, 384], strides = [1, 1]} : vector<4x422xbf16> to vector<4x384xbf16>
    %8 = vector.extract_strided_slice %1 {offsets = [0, 36], sizes = [4, 384], strides = [1, 1]} : vector<4x422xbf16> to vector<4x384xbf16>
    %9 = vector.extract_strided_slice %1 {offsets = [0, 37], sizes = [4, 384], strides = [1, 1]} : vector<4x422xbf16> to vector<4x384xbf16>
    %10 = vector.extract_strided_slice %1 {offsets = [0, 38], sizes = [4, 384], strides = [1, 1]} : vector<4x422xbf16> to vector<4x384xbf16>
    %11 = tpu.concatenate %2, %3, %4, %5, %6, %7, %8, %9, %10 in 0 : vector<4x384xbf16>, vector<4x384xbf16>, vector<4x384xbf16>, vector<4x384xbf16>, vector<4x384xbf16>, vector<4x384xbf16>, vector<4x384xbf16>, vector<4x384xbf16>, vector<4x384xbf16> -> vector<36x384xbf16>
    %c0_2 = arith.constant 0 : index
    %c0_3 = arith.constant 0 : index
    %12 = vector.load %arg3[%c0_2, %c0_3] : memref<8x36xbf16, #tpu.memory_space<vmem>>, vector<8x36xbf16>
    %cst = arith.constant dense<0.000000e+00> : vector<8x384xf32>
    %13 = tpu.matmul %12, %11, %cst {dimension_numbers = #tpu.dot_dimension_numbers<[1], [0], [0], [1], [0, 0, 1, 1], [], []>} : vector<8x36xbf16>, vector<36x384xbf16>, vector<8x384xf32> -> vector<8x384xf32>
    %c0_4 = arith.constant 0 : index
    %c0_5 = arith.constant 0 : index
    %14 = vector.load %arg4[%c0_4, %c0_5] : memref<8x1xf32, #tpu.memory_space<vmem>>, vector<8x1xf32>
    %15 = vector.broadcast %14 : vector<8x1xf32> to vector<8x384xf32>
    %16 = arith.addf %13, %15 : vector<8x384xf32>
    %cst_6 = arith.constant 0.000000e+00 : f32
    %17 = vector.broadcast %cst_6 : f32 to vector<8x384xf32>
    %18 = arith.maximumf %16, %17 : vector<8x384xf32>
    %c0_7 = arith.constant 0 : index
    %c0_8 = arith.constant 0 : index
    %c0_9 = arith.constant 0 : index
    %19 = vector.load %arg5[%c0_7, %c0_8, %c0_9] : memref<1x8x384xf32, #tpu.memory_space<vmem>>, vector<1x8x384xf32>
    %20 = vector.shape_cast %19 : vector<1x8x384xf32> to vector<8x384xf32>
    %21 = vector.shape_cast %18 : vector<8x384xf32> to vector<1x8x384xf32>
    tpu.vector_store %arg5[%c0_7, %c0_8, %c0_9], %21 {strides = array<i32>} : memref<1x8x384xf32, #tpu.memory_space<vmem>>, vector<1x8x384xf32>,
    return
  }
  func.func @transform_0(%arg0: i32, %arg1: i32) -> (i32, i32, i32) {
    %c0_i32 = arith.constant 0 : i32
    %c0_i32_0 = arith.constant 0 : i32
    %c0_i32_1 = arith.constant 0 : i32
    return %arg0, %c0_i32, %c0_i32_0 : i32, i32, i32
  }
  func.func @transform_1(%arg0: i32, %arg1: i32) -> (i32, i32) {
    %c0_i32 = arith.constant 0 : i32
    %c0_i32_0 = arith.constant 0 : i32
    return %arg1, %c0_i32 : i32, i32
  }
  func.func @transform_2(%arg0: i32, %arg1: i32) -> (i32, i32) {
    %c0_i32 = arith.constant 0 : i32
    %c0_i32_0 = arith.constant 0 : i32
    return %arg1, %c0_i32 : i32, i32
  }
  func.func @transform_3(%arg0: i32, %arg1: i32) -> (i32, i32, i32) {
    %c0_i32 = arith.constant 0 : i32
    %c0_i32_0 = arith.constant 0 : i32
    return %arg0, %arg1, %c0_i32 : i32, i32, i32
  }
}

</mosaic_0001>

<bundles_post_ra>
// kernel: tpu_custom_call.1
= control target key start
LH: loop header
LB: loop body
LE: loop exit
PB: predicated region body
PF: predicated region fallthrough
CT: control target
= control target key end

     0   :  { %8 = vsyncpa [#allocation3], 0  ;;  %s1157_s0 = inlined_call_operand.hbm [shape: bf16[2,4,422], index: 0, kind: input, shape index: {}]   ;;  %s1158_s1 = inlined_call_operand.vmem [shape: bf16[8,36], index: 1, kind: input, shape index: {}]   ;;  %s1159_s2 = inlined_call_operand.vmem [shape: f32[8,1], index: 2, kind: input, shape index: {}]   ;;  %s1160_s3 = inlined_call_operand.hbm [shape: f32[2,8,384], index: 3, kind: output, shape index: {}]  }
   0x1   :  { %10 = vsyncpa [#allocation3 + $0x1], 0 }
   0x2   :  { %11 = vsyncpa [#allocation4], 0 }
   0x3   :  { %13 = vsyncpa [#allocation4 + $0x1], 0  ;;  %s908_s12 = smov 0   ;;  %s910_s13 = smov 0  }
   0x4   :  { %s912_s14 = smov 0   ;;  %s914_s15 = smov 0  }
   0x5   :  { %s916_s16 = smov 0   ;;  %s918_s17 = smov 0  }
   0x6 LB: > { %s649_s18 = sadd.s32 4294967295, %s872_s17   ;;  %s650_s19 = sadd.s32 4294967294, %s872_s17   ;;  %s872_s17 = sphi %s918_s17, %s19_s17   ;;  %s868_s16 = sphi %s916_s16, %s1176_s16   ;;  %s864_s15 = sphi %s914_s15, %s1175_s15   ;;  %s860_s14 = sphi %s912_s14, %s1174_s14   ;;  %s856_s13 = sphi %s910_s13, %s1173_s13   ;;  %s852_s12 = sphi %s908_s12, %s1172_s12  }
   0x7   : > { %s31_s20 = sadd.s32 1, %s868_s16  ;;  %s38_s21 = sadd.s32 1, %s860_s14 }
   0x8   : > { %p33_p0 = scmp.ge.s32.totalorder %s31_s20, 2  ;;  %p45_p1 = scmp.ne.s32.totalorder %s860_s14, %s856_s13 }
   0x9   : > { %p46_p2 = scmp.eq.s32.totalorder %s872_s17, 0  ;;  %p51_p3 = scmp.ne.s32.totalorder %s856_s13, %s852_s12 }
   0xa   : > { %s1178_s20 = smov (%p33_p0, %s31_s20), 0  ;;  %p52_p5 = scmp.eq.s32.totalorder %s649_s18, 0 }
   0xb   : > { %p949_p4 = por %p46_p2, %p45_p1  ;;  %s35_s23 = ssub.s32 %s868_s16, %s1178_s20 }
   0xc   : > { %p129_p6 = scmp.eq.s32.totalorder %s649_s18, 1  ;;  %p36_p7 = scmp.eq.s32.totalorder %s35_s23, 0 }
   0xd   : > { %p955_p8 = por %p52_p5, %p51_p3  ;;  %p135_p10 = scmp.eq.s32.totalorder %s650_s19, 1 }
   0xe   : > { %p959_p9 = por %p129_p6, %p45_p1  ;;  %p695_p13 = scmp.lt.s32.totalorder %s872_s17, 2 }
   0xf   : > { %s964_s26 = scalar_select %p36_p7, %s860_s14, %s38_s21  }
  0x10   : > { %s1164_s25 = scalar_select %p959_p9, 1, 0 }
  0x11   : > { %p966_p11 = por %p135_p10, %p51_p3  ;;  %s169_s28 = sand.u32 1, %s860_s14  }
  0x12   : > { %s655_s29 = sshll.u32 %s169_s28, 3  ;;  %s666_s30 = sshll.u32 %s868_s16, 7 }
  0x13   : > { %s1165_s27 = scalar_select %p966_p11, 1, 0 }
  0x14   : > { %s977_s6 = scalar_lea.hbm %s1157_s0, %s666_s30  ;;  %s173_s7 = scalar_lea.vmem [#allocation2], %s655_s29 }
  0x15   : > { %s181_s8 = sshll.u32 %s173_s7, 4  ;;  %p983_p0 = pnand %p695_p13, %p949_p4  ;;  %s979_s8 = int_to_ptr.vmem [resolvable:$true] %s181_s8 }
  0x16   : > { %s170_s10 = scalar_lea.sflag [#allocation3], %s169_s28  ;;  %s760_s11 = scalar_lea.hbm %s977_s6, 128 }
  0x17   : > { %p761_p3 = scmp.ne.s32.totalorder %s977_s6, %s760_s11  ;;  %p762_p5 = pneg %p983_p0 }
  0x18   : > { %s765_s21 = scalar_lea.hbm %s1157_s0, 256  ;;  %p766_p4 = scmp.lt.u32.totalorder %s977_s6, %s1157_s0 }
  0x19   : > { %p763_p6 = pnand %p762_p5, %p761_p3  ;;  %p767_p10 = scmp.lt.u32.totalorder %s765_s21, %s760_s11 }
  0x1a   : > { %p769_p12 = scmp.lt.u32.totalorder %s760_s11, %s977_s6 }
  0x1b   : > { %p764_p7 = pneg %p763_p6  ;;  %p768_p13 = por %p767_p10, %p766_p4 }
  0x1d   : > { %p770_p1 = por %p769_p12, %p768_p13 }
  0x1f   : > { %p771_p2 = pnand %p770_p1, %p764_p7 }
  0x21   : > { %774 = shalt.err (!%p771_p2)
}
  0x22   : > { %s775_s28 = scalar_lea.vmem %s979_s8, 128  ;;  %s874_s29 = smov [#allocation2]  }
  0x23   : > { %p776_p3 = scmp.ne.s32.totalorder %s979_s8, %s775_s28  ;;  %s780_s30 = sshll.u32 %s874_s29, 4  ;;  %s781_s30 = int_to_ptr.vmem [resolvable:$false] %s780_s30 }
  0x24   : > { %s782_s4 = scalar_lea.vmem %s781_s30, 256  ;;  %p783_p9 = scmp.lt.s32.totalorder %s979_s8, %s781_s30 }
  0x25   : > { %p778_p6 = pnand %p776_p3, %p762_p5  ;;  %p784_p4 = scmp.lt.s32.totalorder %s782_s4, %s775_s28 }
  0x27   : > { %p779_p11 = pneg %p778_p6  ;;  %p785_p10 = por %p784_p4, %p783_p9 }
  0x29   : > { %p786_p12 = pnand %p785_p10, %p779_p11 }
  0x2b   : > { %789 = shalt.err (!%p786_p12)
}
  0x2c   : > { %690 = dma.hbm_to_vmem [thread:$0]  (!%p983_p0), %s977_s6, 128, %s979_s8, %s170_s10  }
  0x2d   : > { %p1167_p1 = scmp.lt.s32.totalorder %s872_s17, 3  ;;  %p1168_p2 = scmp.ge.s32.totalorder %s872_s17, 1 }
  0x2f   : > { %p187_p5 = pnand %p1168_p2, %p1167_p1 }
  0x30   : > { %s1019_s5 = sand.u32 (!%p187_p5), 1, %s856_s13  }
  0x31   : > { %190 = sbr.rel (%p187_p5) target bundleno = 477 (0x1dd), region = 32  ;;  %s659_s7 = sshll.u32 (!%p187_p5), %s1019_s5, 3 }
  0x32   : > { %s193_s11 = scalar_lea.sflag (!%p187_p5), [#allocation3], %s1019_s5  ;;  %s196_s18 = scalar_lea.vmem (!%p187_p5), [#allocation2], %s659_s7 }
  0x38   : > { %843 = dma.done.wait (%p955_p8), %s193_s11, 128  }
  0x39   : > { %845 = vsyncadd (%p955_p8), %s193_s11, 4294967168  ;;  %v242_v0 = vlaneseq  ;;  %v875_v1 = vmov 1983009808   ;;  %v236_v6 = vld [vmem:[%s196_s18] sm:$0xff]  ;;  %s876_s6 = smov 126   ;;  %s877_s8 = smov 127  }
  0x3a   : > { %v240_v2 = vunpack.c.l.s4 %v875_v1  ;;  %v254_v8 = vcombine.low %v236_v6, %v236_v6  ;;  %v238_v11 = vcombine.high %v236_v6, %v236_v6  ;;  %v878_v16 = vmov 0.0   ;;  %s879_s24 = smov 110   ;;  %s880_s9 = smov 109   ;;  %v415_v20 = vld [vmem:[%s1159_s2] sm:$0xff] }
  0x3b   : > { %v243_v3 = vshrl.u32 %v242_v0, 7  ;;  %671 = vmatprep.subr.bf16.mxu1 %v878_v16  ;;  %s881_s10 = smov 108   ;;  %s882_s19 = smov 92   ;;  %v884_v19 = vmov 0   ;;  %vm885_vm0 = vmmov 0   ;;  %vm271_vm1 = vcmask 1039360  }
  0x3c   : > { %v241_v4 = vunpack.c.0.s8 %v240_v2  ;;  %s883_s21 = smov 91   ;;  %466 = vmatprep.mubr.bf16.mxu0 %v884_v19  ;;  %677 = vmatprep.mubr.msk.bf16.mxu1 %vm885_vm0, %v878_v16  ;;  %s886_s22 = smov 90   ;;  %vm285_vm2 = vcmask 1031168   ;;  %vm363_vm3 = vcmask 1041408   ;;  %vm298_vm4 = vcmask 900096  }
  0x3d   : > { %757 = vset.pattern.permute.xlu0 %v884_v19  ;;  %vm380_vm5 = vcmask 1045504   ;;  %vm373_vm6 = vcmask 1043456   ;;  %vm323_vm7 = vcmask 883712   ;;  %vm335_vm8 = vcmask 752640   ;;  %s681_s4 = smul.u32 24, %s1019_s5  ;;  %p1169_p9 = scmp.ne.s32.totalorder %s1164_s25, 0 }
  0x3e   : > { %v244_v5 = vsub.s32 %v241_v4, %v243_v3  ;;  %vm311_vm9 = vcmask 891904   ;;  %vm347_vm10 = vcmask 744448   ;;  %vm359_vm11 = vcmask 736256   ;;  %s682_s7 = smul.u32 384, %s864_s15 }
  0x3f   : > { %vm421_vm12 = vcmask 293888   ;;  %s226_s11 = scalar_lea.vmem [#allocation5], %s681_s4 }
  0x40   : > { %v1027_v7 = vrot.slane %v236_v6, %v244_v5  ;;  %v261_v9 = vrot.slane %v254_v8, %v244_v5  ;;  %v1037_v14 = vrot.slane %v238_v11, %v244_v5  ;;  %s538_s18 = sshll.u32 %s226_s11, 4  ;;  %s1108_s15 = scalar_lea.hbm %s1160_s3, %s682_s7  ;;  %s1110_s18 = int_to_ptr.vmem [resolvable:$true] %s538_s18 }
  0x42   : > { %279 = vrot.lane.b32.xlu1 %v1027_v7, %s876_s6  ;;  %267 = vrot.lane.b32.xlu0 %v1027_v7, %s877_s8  ;;  %v275_v10 = vcombine.low %v1027_v7, %v1027_v7  ;;  %v262_v12 = vcombine.high %v261_v9, %v261_v9  ;;  %v1035_v13 = vcombine.high %v1027_v7, %v1027_v7 }
  0x43   : > { %v276_v15 = vcombine.low %v1037_v14, %v1037_v14  ;;  %v289_v17 = vcombine.low %v261_v9, %v261_v9  ;;  %v302_v18 = vcombine.high %v1037_v14, %v1037_v14 }
  0x46   : > { %263 = vrot.lane.b32.xlu1 %v261_v9, %s877_s8  ;;  %277 = vrot.lane.b32.xlu0 %v275_v10, %s876_s6 }
  0x4a   : > { %265 = vrot.lane.b32.xlu0 %v262_v12, %s877_s8  ;;  %269 = vrot.lane.b32.xlu1 %v1035_v13, %s877_s8 }
  0x4e   : > { %292 = vrot.lane.b32.xlu1 %v261_v9, %s879_s24  ;;  %281 = vrot.lane.b32.xlu0 %v276_v15, %s876_s6 }
  0x52   : > { %283 = vrot.lane.b32.xlu1 %v1037_v14, %s876_s6  ;;  %294 = vrot.lane.b32.xlu0 %v275_v10, %s879_s24 }
  0x56   : > { %296 = vrot.lane.b32.xlu1 %v1027_v7, %s879_s24  ;;  %290 = vrot.lane.b32.xlu0 %v289_v17, %s879_s24  ;;  %s522_s24 = scalar_lea.sflag [#allocation4], %s1019_s5 }
  0x5a   : > { %307 = vrot.lane.b32.xlu1 %v1037_v14, %s880_s9  ;;  %305 = vrot.lane.b32.xlu0 %v1035_v13, %s880_s9 }
  0x5e   : > { %319 = vrot.lane.b32.xlu1 %v1027_v7, %s881_s10  ;;  %317 = vrot.lane.b32.xlu0 %v262_v12, %s881_s10 }
  0x62   : > { %315 = vrot.lane.b32.xlu1 %v261_v9, %s881_s10  ;;  %303 = vrot.lane.b32.xlu0 %v1027_v7, %s880_s9 }
  0x66   : > { %331 = vrot.lane.b32.xlu1 %v276_v15, %s882_s19  ;;  %329 = vrot.lane.b32.xlu0 %v1027_v7, %s882_s19 }
  0x6a   : > { %321 = vrot.lane.b32.xlu1 %v1035_v13, %s881_s10  ;;  %309 = vrot.lane.b32.xlu0 %v302_v18, %s880_s9  ;;  %s790_s9 = scalar_lea.vmem %s1110_s18, 384  ;;  %s887_s10 = smov [#allocation5]  }
  0x6b   : > { %p791_p8 = scmp.ne.s32.totalorder %s1110_s18, %s790_s9 }
  0x6d   : > { %p792_p11 = pnand %p791_p8, %p1169_p9 }
  0x6e   : > { %341 = vrot.lane.b32.xlu1 %v261_v9, %s883_s21  ;;  %327 = vrot.lane.b32.xlu0 %v275_v10, %s882_s19 }
  0x6f   : > { %p793_p0 = pneg %p792_p11 }
  0x72   : > { %333 = vrot.lane.b32.xlu1 %v1037_v14, %s882_s19  ;;  %343 = vrot.lane.b32.xlu0 %v275_v10, %s883_s21  ;;  %s794_s19 = sshll.u32 %s887_s10, 4  ;;  %s795_s19 = int_to_ptr.vmem [resolvable:$false] %s794_s19 }
  0x73   : > { %p797_p7 = scmp.lt.s32.totalorder %s1110_s18, %s795_s19 }
  0x76   : > { %345 = vrot.lane.b32.xlu1 %v1027_v7, %s883_s21  ;;  %339 = vrot.lane.b32.xlu0 %v289_v17, %s883_s21  ;;  %s796_s21 = scalar_lea.vmem %s795_s19, 768 }
  0x77   : > { %p798_p13 = scmp.lt.s32.totalorder %s796_s21, %s790_s9 }
  0x79   : > { %p799_p3 = por %p798_p13, %p797_p7 }
  0x7a   : > { %353 = vrot.lane.b32.xlu1 %v1035_v13, %s886_s22  ;;  %351 = vrot.lane.b32.xlu0 %v1027_v7, %s886_s22 }
  0x7b   : > { %p800_p6 = pnand %p799_p3, %p793_p0 }
  0x7e   : > { %357 = vrot.lane.b32.xlu1 %v302_v18, %s886_s22  ;;  %355 = vrot.lane.b32.xlu0 %v1037_v14, %s886_s22 }
  0x82   : > { %418 = vperm.xlu0 %757, %v415_v20  }
  0xb4   : > { %v280_v21 = vpop.permute.xlu1 %279  ;;  %v268_v22 = vpop.permute.xlu0 %267 }
  0xb8   : > { %v264_v23 = vpop.permute.xlu1 %263  ;;  %v278_v24 = vpop.permute.xlu0 %277 }
  0xb9   : > { %v286_v41 = vsel %vm285_vm2, %v278_v24, %v280_v21 }
  0xbc   : > { %v266_v25 = vpop.permute.xlu0 %265  ;;  %v270_v26 = vpop.permute.xlu1 %269 }
  0xbd   : > { %v273_v29 = vsel %vm271_vm1, %v266_v25, %v268_v22  ;;  %v272_v31 = vsel %vm271_vm1, %v264_v23, %v266_v25  ;;  %v274_v35 = vsel %vm271_vm1, %v268_v22, %v270_v26 }
  0xbe   : > { %v369_v32 = vsel %vm363_vm3, %v1035_v13, %v273_v29  ;;  %v366_v38 = vsel %vm363_vm3, %v1027_v7, %v272_v31  ;;  %v372_v42 = vsel %vm363_vm3, %v1037_v14, %v274_v35 }
  0xbf   : > { %v375_v47 = vsel %vm373_vm6, %v366_v38, %v286_v41 }
  0xc0   : > { %v293_v27 = vpop.permute.xlu1 %292  ;;  %v282_v28 = vpop.permute.xlu0 %281 }
  0xc1   : > { %v287_v30 = vsel %vm285_vm2, %v280_v21, %v282_v28 }
  0xc2   : > { %v377_v37 = vsel %vm373_vm6, %v369_v32, %v287_v30 }
  0xc4   : > { %v284_v33 = vpop.permute.xlu1 %283  ;;  %v295_v34 = vpop.permute.xlu0 %294 }
  0xc5   : > { %v300_v36 = vsel %vm298_vm4, %v293_v27, %v295_v34  ;;  %v288_v39 = vsel %vm285_vm2, %v282_v28, %v284_v33 }
  0xc6   : > { %v385_v40 = vsel %vm380_vm5, %v377_v37, %v300_v36  ;;  %v379_v48 = vsel %vm373_vm6, %v372_v42, %v288_v39 }
  0xc7   : > { %434 = vmatprep.subr.bf16.mxu0 %v385_v40 }
  0xc8   : > { %v297_v43 = vpop.permute.xlu1 %296  ;;  %v291_v44 = vpop.permute.xlu0 %290 }
  0xc9   : > { %v301_v45 = vsel %vm298_vm4, %v295_v34, %v297_v43  ;;  %v299_v46 = vsel %vm298_vm4, %v291_v44, %v293_v27  ;;  %v414_v34 = vld [vmem:[%s1158_s1] sm:$0xf] }
  0xca   : > { %v382_v49 = vsel %vm380_vm5, %v375_v47, %v299_v46  ;;  %v388_v50 = vsel %vm380_vm5, %v379_v48, %v301_v45 }
  0xcb   : > { %435 = vmatpush1.bf16.msra.mxu0 %v382_v49  ;;  %672 = vmatpush3.bf16.msra.mxu1 %v388_v50 }
  0xcc   : > { %v308_v51 = vpop.permute.xlu1 %307  ;;  %v306_v52 = vpop.permute.xlu0 %305  ;;  %673 = vmatprep.subr.bf16.mxu1 %v878_v16 }
  0xcd   : > { %v313_v1 = vsel %vm311_vm9, %v306_v52, %v308_v51 }
  0xd0   : > { %v320_v53 = vpop.permute.xlu1 %319  ;;  %v318_v54 = vpop.permute.xlu0 %317 }
  0xd1   : > { %v325_v63 = vsel %vm323_vm7, %v318_v54, %v320_v53 }
  0xd2   : > { %v395_v2 = vsel %vm363_vm3, %v313_v1, %v325_v63 }
  0xd4   : > { %v316_v55 = vpop.permute.xlu1 %315  ;;  %v304_v56 = vpop.permute.xlu0 %303 }
  0xd5   : > { %v324_v3 = vsel %vm323_vm7, %v316_v55, %v318_v54  ;;  %v312_v4 = vsel %vm311_vm9, %v304_v56, %v306_v52 }
  0xd6   : > { %v392_v14 = vsel %vm363_vm3, %v312_v4, %v324_v3 }
  0xd8   : > { %v332_v57 = vpop.permute.xlu1 %331  ;;  %v330_v58 = vpop.permute.xlu0 %329 }
  0xd9   : > { %v337_v0 = vsel %vm335_vm8, %v330_v58, %v332_v57 }
  0xda   : > { %v402_v10 = vsel %vm373_vm6, %v395_v2, %v337_v0 }
  0xdc   : > { %v322_v59 = vpop.permute.xlu1 %321  ;;  %v310_v60 = vpop.permute.xlu0 %309 }
  0xdd   : > { %v326_v7 = vsel %vm323_vm7, %v320_v53, %v322_v59  ;;  %v314_v8 = vsel %vm311_vm9, %v308_v51, %v310_v60 }
  0xde   : > { %v398_v15 = vsel %vm363_vm3, %v314_v8, %v326_v7 }
  0xe0   : > { %v342_v61 = vpop.permute.xlu1 %341  ;;  %v328_v62 = vpop.permute.xlu0 %327 }
  0xe1   : > { %v336_v11 = vsel %vm335_vm8, %v328_v62, %v330_v58 }
  0xe2   : > { %v400_v21 = vsel %vm373_vm6, %v392_v14, %v336_v11 }
  0xe4   : > { %v334_v5 = vpop.permute.xlu1 %333  ;;  %v344_v6 = vpop.permute.xlu0 %343 }
  0xe5   : > { %v349_v9 = vsel %vm347_vm10, %v342_v61, %v344_v6  ;;  %v338_v12 = vsel %vm335_vm8, %v332_v57, %v334_v5 }
  0xe6   : > { %v409_v13 = vsel %vm380_vm5, %v402_v10, %v349_v9  ;;  %v404_v22 = vsel %vm373_vm6, %v398_v15, %v338_v12 }
  0xe7   : > { %436 = vmatprep.subr.bf16.mxu0 %v409_v13 }
  0xe8   : > { %v346_v17 = vpop.permute.xlu1 %345  ;;  %v340_v18 = vpop.permute.xlu0 %339 }
  0xe9   : > { %v350_v19 = vsel %vm347_vm10, %v344_v6, %v346_v17  ;;  %v348_v20 = vsel %vm347_vm10, %v340_v18, %v342_v61 }
  0xea   : > { %v406_v23 = vsel %vm380_vm5, %v400_v21, %v348_v20  ;;  %v412_v24 = vsel %vm380_vm5, %v404_v22, %v350_v19 }
  0xeb   : > { %437 = vmatpush1.bf16.msra.mxu0 %v406_v23  ;;  %674 = vmatpush3.bf16.msra.mxu1 %v412_v24 }
  0xec   : > { %v354_v25 = vpop.permute.xlu1 %353  ;;  %v352_v26 = vpop.permute.xlu0 %351  ;;  %675 = vmatprep.subr.bf16.mxu1 %v878_v16 }
  0xed   : > { %v360_v27 = vsel %vm359_vm11, %v352_v26, %v354_v25 }
  0xee   : > { %v426_v32 = vsel %vm363_vm3, %v360_v27, 0 }
  0xf0   : > { %v358_v28 = vpop.permute.xlu1 %357  ;;  %v356_v29 = vpop.permute.xlu0 %355 }
  0xf1   : > { %v361_v30 = vsel %vm359_vm11, %v354_v25, %v356_v29  ;;  %v362_v31 = vsel %vm359_vm11, %v356_v29, %v358_v28 }
  0xf2   : > { %660 = vmatprep.subr.msk.bf16.mxu0 %vm363_vm3, %v361_v30  ;;  %v432_v33 = vsel %vm363_vm3, %v362_v31, 0 }
  0xf3   : > { %439 = vmatpush1.bf16.msra.mxu0 %v426_v32  ;;  %676 = vmatpush3.bf16.msra.mxu1 %v432_v33 }
  0xf6   : > { %661 = vmatmul.mubr.msk.bf16.vlgmr.msra.gmra.mrb[0].mxu0 %vm421_vm12, %v414_v34  ;;  %678 = vmatmul.mubr.msk.bf16.vlgmr.msra.gmra.mrb[0].mxu1 %vm421_vm12, %v414_v34 }
 0x101   : > { %v419_v16 = vpop.permute.xlu0 %418 }
 0x1c9   : > { %v468_v35 = vpop.f32.mrb[0].mxu0  ;;  %v509_v36 = vpop.f32.mrb[0].mxu1 }
 0x1ca   : > { %v469_v37 = vadd.f32 %v468_v35, %v419_v16  ;;  %v510_v38 = vadd.f32 %v509_v36, %v419_v16  ;;  %v470_v39 = vpop.f32.mrb[1].mxu0  ;;  %v679_v40 = vpop.f32.mrb[1].mxu1 }
 0x1cb   : > { %v471_v41 = vadd.f32 %v470_v39, %v419_v16  ;;  %v472_v42 = vpop.f32.mrb[2].mxu0  ;;  %v512_v43 = vpop.f32.mrb[2].mxu1 }
 0x1cc   : > { %v515_v44 = vmax.f32 %v469_v37, 0.0  ;;  %v517_v45 = vmax.f32 %v510_v38, 0.0  ;;  %v473_v46 = vpop.f32.mrb[3].mxu0  ;;  %v680_v47 = vpop.f32.mrb[3].mxu1 }
 0x1cd   : > { %v516_v48 = vmax.f32 %v471_v41, 0.0 }
 0x1ce   : > { %518 = vst [vmem:[%s226_s11] sm:$0xff] %v515_v44  ;;  %520 = vst [vmem:[%s226_s11 + $0x10] sm:$0xff] %v517_v45 }
 0x1cf   : > { %519 = vst [vmem:[%s226_s11 + $0x8] sm:$0xff] %v516_v48 }
 0x1d0   : > { %803 = shalt.err (!%p800_p6)
}
 0x1d1   : > { %s804_s5 = scalar_lea.hbm %s1108_s15, 384  ;;  %s808_s28 = scalar_lea.hbm %s1160_s3, 768 }
 0x1d2   : > { %p805_p4 = scmp.ne.s32.totalorder %s1108_s15, %s804_s5  ;;  %p809_p1 = scmp.lt.u32.totalorder %s1108_s15, %s1160_s3 }
 0x1d3   : > { %p810_p2 = scmp.lt.u32.totalorder %s808_s28, %s804_s5  ;;  %p812_p8 = scmp.lt.u32.totalorder %s804_s5, %s1108_s15 }
 0x1d4   : > { %p806_p10 = pnand %p805_p4, %p1169_p9 }
 0x1d5   : > { %p811_p5 = por %p810_p2, %p809_p1 }
 0x1d6   : > { %p807_p12 = pneg %p806_p10 }
 0x1d7   : > { %p813_p11 = por %p812_p8, %p811_p5 }
 0x1d9   : > { %p814_p0 = pnand %p813_p11, %p807_p12 }
 0x1db   : > { %817 = shalt.err (!%p814_p0)
}
 0x1dc   : > { %685 = dma.vmem_to_hbm [thread:$0]  (%p1169_p9), %s1110_s18, 384, %s1108_s15, %s522_s24  }
 0x1dd PF: > { %s550_s4 = sand.u32 1, %s852_s12   ;;  %p1170_p7 = scmp.ne.s32.totalorder %s1165_s27, 0 }
 0x1de   : > { %p1171_p13 = scmp.ge.s32.totalorder %s872_s17, 2  ;;  %s551_s7 = scalar_lea.sflag [#allocation4], %s550_s4 }
 0x1e0   : > { %p692_p3 = pnand %p1171_p13, %p1170_p7 }
 0x1e2   : > { %847 = dma.done.wait (!%p692_p3), %s551_s7, 384  }
 0x1e3   : > { %849 = vsyncadd (!%p692_p3), %s551_s7, 4294966912  ;;  %s19_s17 = sadd.s32 1, %s872_s17   ;;  %s1172_s12 = smov %s856_s13 }
 0x1e4   : > { %p16_p6 = scmp.ge.s32.totalorder %s19_s17, 4   ;;  %s1173_s13 = smov %s860_s14 }
 0x1e5   : > { %s1174_s14 = smov %s964_s26  ;;  %s1175_s15 = smov %s868_s16 }
 0x1e6   : > { %s1176_s16 = smov %s1178_s20  ;;  %18 = sbr.rel (!%p16_p6) target bundleno = 6 (0x6), region = 83 }
 0x1ed   :  { %556 = vsyncpa [#allocation3], 1 }
 0x1ee   :  { %558 = vsyncpa [#allocation3 + $0x1], 1 }
 0x1ef   :  { %559 = vsyncpa [#allocation4], 1 }
 0x1f0   :  { %561 = vsyncpa [#allocation4 + $0x1], 1 }

</bundles_post_ra>
